<compile_context>
chip_gen: v7x
topology: tpu7x:2x2x1
jax: 0.10.0
libtpu: 0.0.40
codegen_flags: <defaults>
</compile_context>

<pallas_src>
import functools

import jax
import jax.numpy as jnp
from jax import lax
from jax.experimental import pallas as pl
from jax.experimental.pallas import tpu as pltpu


def _stats_kernel(x_ref, mean_ref, inv_std_ref, sum_acc, sumsq_acc, *,
                  count, eps):
    # x_ref: (1, C, T) f32 tile; outputs/scratch: (C, 1) f32, resident in VMEM
    # across the whole grid (constant output block index).
    n = pl.program_id(0)
    t = pl.program_id(1)

    @pl.when((n == 0) & (t == 0))
    def _init():
        sum_acc[...] = jnp.zeros_like(sum_acc)
        sumsq_acc[...] = jnp.zeros_like(sumsq_acc)

    x = x_ref[0]                                          # (C, T)
    sum_acc[...] += jnp.sum(x, axis=-1, keepdims=True)    # (C, 1)
    sumsq_acc[...] += jnp.sum(x * x, axis=-1, keepdims=True)

    @pl.when((n == pl.num_programs(0) - 1) & (t == pl.num_programs(1) - 1))
    def _finalize():
        inv_count = 1.0 / count
        mean = sum_acc[...] * inv_count
        # Single-pass biased variance E[x^2] - mean^2 (f32 accumulation);
        # clamp guards tiny negative values from cancellation.
        var = jnp.maximum(sumsq_acc[...] * inv_count - mean * mean, 0.0)
        mean_ref[...] = mean
        inv_std_ref[...] = lax.rsqrt(var + eps)


def _apply_kernel(x_ref, scale_ref, shift_ref, o_ref):
    # x_ref/o_ref: (1, C, T); scale/shift: (1, C, 1) broadcast along lanes.
    o_ref[...] = x_ref[...] * scale_ref[...] + shift_ref[...]


def _pick_lane_tile(hw, preferred=512):
    """Largest 128-multiple tile <= preferred that divides hw, else full hw."""
    if hw % 128 == 0:
        t = preferred
        while t >= 128:
            if hw % t == 0:
                return t
            t //= 2
    return hw  # full-extent last dim is always a legal block


def conditional_batchnorm2d(x, y, embed_weight, num_features, eps=1e-5):
    """x: (N, C, H, W) f32, y: (N,) int32, embed_weight: (num_classes, 2C)."""
    N, C, H, W = x.shape
    assert C == num_features
    HW = H * W
    x_flat = x.reshape(N, C, HW)

    T = _pick_lane_tile(HW)
    grid = (N, HW // T)

    # ---- Pass A: fused per-channel sum / sumsq -> mean, inv_std -----------
    mean, inv_std = pl.pallas_call(
        functools.partial(_stats_kernel, count=float(N * HW), eps=float(eps)),
        out_shape=(jax.ShapeDtypeStruct((C, 1), jnp.float32),
                   jax.ShapeDtypeStruct((C, 1), jnp.float32)),
        grid=grid,
        in_specs=[pl.BlockSpec((1, C, T), lambda n, t: (n, 0, t))],
        out_specs=(pl.BlockSpec((C, 1), lambda n, t: (0, 0)),
                   pl.BlockSpec((C, 1), lambda n, t: (0, 0))),
        scratch_shapes=[pltpu.VMEM((C, 1), jnp.float32),
                        pltpu.VMEM((C, 1), jnp.float32)],
        compiler_params=pltpu.CompilerParams(
            dimension_semantics=("arbitrary", "arbitrary")),
    )(x_flat)

    # ---- Fold per-(n, c) affine once (tiny (N, C) arrays, plain JAX) ------
    # TODO(synk): could move the embedding row-gather into the apply kernel
    # via PrefetchScalarGridSpec(num_scalar_prefetch=1); gain is tiny.
    gb = embed_weight[y].astype(jnp.float32)              # (N, 2C)
    gamma = gb[:, :C]
    beta = gb[:, C:]
    istd = inv_std[:, 0][None, :]                         # (1, C)
    mu = mean[:, 0][None, :]                              # (1, C)
    scale = gamma * istd                                  # (N, C)
    shift = beta - mu * scale                             # (N, C)
    scale3 = scale[:, :, None].astype(x.dtype)            # (N, C, 1)
    shift3 = shift[:, :, None].astype(x.dtype)

    # ---- Pass B: out = x * scale + shift (lane-dense, fully parallel) -----
    out_flat = pl.pallas_call(
        _apply_kernel,
        out_shape=jax.ShapeDtypeStruct((N, C, HW), x.dtype),
        grid=grid,
        in_specs=[
            pl.BlockSpec((1, C, T), lambda n, t: (n, 0, t)),
            pl.BlockSpec((1, C, 1), lambda n, t: (n, 0, 0)),
            pl.BlockSpec((1, C, 1), lambda n, t: (n, 0, 0)),
        ],
        out_specs=pl.BlockSpec((1, C, T), lambda n, t: (n, 0, t)),
        compiler_params=pltpu.CompilerParams(
            dimension_semantics=("parallel", "parallel")),
    )(x_flat, scale3, shift3)

    # TODO(synk): nn.BatchNorm2d running_mean/var buffer update (training-time
    # side effect) does not affect this forward output and is not modeled.
    return out_flat.reshape(N, C, H, W)


def _reference(x, y, embed_weight, num_features):
    eps = 1e-5
    mean = jnp.mean(x, axis=(0, 2, 3), keepdims=True)
    var = jnp.mean((x - mean) ** 2, axis=(0, 2, 3), keepdims=True)
    x_hat = (x - mean) / jnp.sqrt(var + eps)
    gb = embed_weight[y]
    gamma = gb[:, :num_features][:, :, None, None]
    beta = gb[:, num_features:][:, :, None, None]
    return gamma * x_hat + beta


if __name__ == "__main__":
    num_features = 4
    num_classes = 10
    N, H, W = 2, 16, 16

    key = jax.random.PRNGKey(0)
    kx, ky, ke = jax.random.split(key, 3)

    x = jax.random.normal(kx, (N, num_features, H, W), dtype=jnp.float32)
    y = jax.random.randint(ky, (N,), 0, num_classes, dtype=jnp.int32)

    # Deterministic embedding init mimicking the module's __init__ (gammas 1.0,
    # betas 0.0) plus a small perturbation so the affine path is exercised.
    pert = 0.1 * jax.random.normal(ke, (num_classes, 2 * num_features),
                                   dtype=jnp.float32)
    base = jnp.concatenate(
        [jnp.ones((num_classes, num_features), jnp.float32),
         jnp.zeros((num_classes, num_features), jnp.float32)], axis=1)
    embed_weight = base + pert

    out = conditional_batchnorm2d(x, y, embed_weight, num_features)
    out = jax.block_until_ready(out)

    ref = _reference(x, y, embed_weight, num_features)
    assert out.shape == (N, num_features, H, W)
    assert jnp.allclose(out, ref, atol=1e-4, rtol=1e-4), "mismatch vs reference"

    print("KERNEL_OK")
</pallas_src>

<mosaic_0001>
module attributes {stable_mosaic.version = 11 : i64} {
  func.func @_stats_kernel(%arg0: i32, %arg1: i32, %arg2: memref<1x4x256xf32, #tpu.memory_space<vmem>>, %arg3: memref<4x1xf32, #tpu.memory_space<vmem>>, %arg4: memref<4x1xf32, #tpu.memory_space<vmem>>, %arg5: memref<4x1xf32, #tpu.memory_space<vmem>>, %arg6: memref<4x1xf32, #tpu.memory_space<vmem>>) attributes {dimension_semantics = [#tpu.dimension_semantics<arbitrary>, #tpu.dimension_semantics<arbitrary>], iteration_bounds = array<i64: 2, 1>, scalar_prefetch = 0 : i64, scratch_operands = 2 : i64, tpu.core_type = #tpu.core_type<tc>, window_params = [{transform_indices = @transform_0, window_bounds = array<i64: 1, 4, 256>}, {pipeline_mode = #tpu.pipeline_mode<synchronous>, transform_indices = @transform_1, window_bounds = array<i64: 4, 1>}, {pipeline_mode = #tpu.pipeline_mode<synchronous>, transform_indices = @transform_2, window_bounds = array<i64: 4, 1>}]} {
    %c0_i32 = arith.constant 0 : i32
    %0 = arith.cmpi eq, %arg0, %c0_i32 : i32
    %c0_i32_0 = arith.constant 0 : i32
    %1 = arith.cmpi eq, %arg1, %c0_i32_0 : i32
    %2 = arith.andi %0, %1 : i1
    %3 = arith.extui %2 : i1 to i32
    %c0_i32_1 = arith.constant 0 : i32
    %4 = arith.cmpi ne, %3, %c0_i32_1 : i32
    scf.if %4 {
      %cst_15 = arith.constant 0.000000e+00 : f32
      %23 = vector.broadcast %cst_15 : f32 to vector<4x1xf32>
      %c0_16 = arith.constant 0 : index
      %c0_17 = arith.constant 0 : index
      %24 = vector.load %arg5[%c0_16, %c0_17] : memref<4x1xf32, #tpu.memory_space<vmem>>, vector<4x1xf32>
      tpu.vector_store %arg5[%c0_16, %c0_17], %23 {strides = array<i32>} : memref<4x1xf32, #tpu.memory_space<vmem>>, vector<4x1xf32>,
      %cst_18 = arith.constant 0.000000e+00 : f32
      %25 = vector.broadcast %cst_18 : f32 to vector<4x1xf32>
      %c0_19 = arith.constant 0 : index
      %c0_20 = arith.constant 0 : index
      %26 = vector.load %arg6[%c0_19, %c0_20] : memref<4x1xf32, #tpu.memory_space<vmem>>, vector<4x1xf32>
      tpu.vector_store %arg6[%c0_19, %c0_20], %25 {strides = array<i32>} : memref<4x1xf32, #tpu.memory_space<vmem>>, vector<4x1xf32>,
    } else {
    }
    %c0 = arith.constant 0 : index
    %c0_2 = arith.constant 0 : index
    %c0_3 = arith.constant 0 : index
    %5 = vector.load %arg2[%c0, %c0_2, %c0_3] : memref<1x4x256xf32, #tpu.memory_space<vmem>>, vector<1x4x256xf32>
    %6 = vector.shape_cast %5 : vector<1x4x256xf32> to vector<4x256xf32>
    %c0_4 = arith.constant 0 : index
    %c0_5 = arith.constant 0 : index
    %7 = vector.load %arg5[%c0_4, %c0_5] : memref<4x1xf32, #tpu.memory_space<vmem>>, vector<4x1xf32>
    %cst = arith.constant dense<0.000000e+00> : vector<4xf32>
    %8 = vector.multi_reduction <add>, %6, %cst [1] : vector<4x256xf32> to vector<4xf32>
    %9 = vector.shape_cast %8 : vector<4xf32> to vector<4x1xf32>
    %10 = arith.addf %7, %9 : vector<4x1xf32>
    %c0_6 = arith.constant 0 : index
    %c0_7 = arith.constant 0 : index
    %11 = vector.load %arg5[%c0_6, %c0_7] : memref<4x1xf32, #tpu.memory_space<vmem>>, vector<4x1xf32>
    tpu.vector_store %arg5[%c0_6, %c0_7], %10 {strides = array<i32>} : memref<4x1xf32, #tpu.memory_space<vmem>>, vector<4x1xf32>,
    %c0_8 = arith.constant 0 : index
    %c0_9 = arith.constant 0 : index
    %12 = vector.load %arg6[%c0_8, %c0_9] : memref<4x1xf32, #tpu.memory_space<vmem>>, vector<4x1xf32>
    %13 = arith.mulf %6, %6 : vector<4x256xf32>
    %cst_10 = arith.constant dense<0.000000e+00> : vector<4xf32>
    %14 = vector.multi_reduction <add>, %13, %cst_10 [1] : vector<4x256xf32> to vector<4xf32>
    %15 = vector.shape_cast %14 : vector<4xf32> to vector<4x1xf32>
    %16 = arith.addf %12, %15 : vector<4x1xf32>
    %c0_11 = arith.constant 0 : index
    %c0_12 = arith.constant 0 : index
    %17 = vector.load %arg6[%c0_11, %c0_12] : memref<4x1xf32, #tpu.memory_space<vmem>>, vector<4x1xf32>
    tpu.vector_store %arg6[%c0_11, %c0_12], %16 {strides = array<i32>} : memref<4x1xf32, #tpu.memory_space<vmem>>, vector<4x1xf32>,
    %c1_i32 = arith.constant 1 : i32
    %18 = arith.cmpi eq, %arg0, %c1_i32 : i32
    %c0_i32_13 = arith.constant 0 : i32
    %19 = arith.cmpi eq, %arg1, %c0_i32_13 : i32
    %20 = arith.andi %18, %19 : i1
    %21 = arith.extui %20 : i1 to i32
    %c0_i32_14 = arith.constant 0 : i32
    %22 = arith.cmpi ne, %21, %c0_i32_14 : i32
    scf.if %22 {
      %c0_15 = arith.constant 0 : index
      %c0_16 = arith.constant 0 : index
      %23 = vector.load %arg5[%c0_15, %c0_16] : memref<4x1xf32, #tpu.memory_space<vmem>>, vector<4x1xf32>
      %cst_17 = arith.constant 0.001953125 : f32
      %24 = vector.broadcast %cst_17 : f32 to vector<4x1xf32>
      %25 = arith.mulf %23, %24 : vector<4x1xf32>
      %c0_18 = arith.constant 0 : index
      %c0_19 = arith.constant 0 : index
      %26 = vector.load %arg6[%c0_18, %c0_19] : memref<4x1xf32, #tpu.memory_space<vmem>>, vector<4x1xf32>
      %cst_20 = arith.constant 0.001953125 : f32
      %27 = vector.broadcast %cst_20 : f32 to vector<4x1xf32>
      %28 = arith.mulf %26, %27 : vector<4x1xf32>
      %29 = arith.mulf %25, %25 : vector<4x1xf32>
      %30 = arith.subf %28, %29 : vector<4x1xf32>
      %cst_21 = arith.constant 0.000000e+00 : f32
      %31 = vector.broadcast %cst_21 : f32 to vector<4x1xf32>
      %32 = arith.maximumf %30, %31 : vector<4x1xf32>
      %c0_22 = arith.constant 0 : index
      %c0_23 = arith.constant 0 : index
      %33 = vector.load %arg3[%c0_22, %c0_23] : memref<4x1xf32, #tpu.memory_space<vmem>>, vector<4x1xf32>
      tpu.vector_store %arg3[%c0_22, %c0_23], %25 {strides = array<i32>} : memref<4x1xf32, #tpu.memory_space<vmem>>, vector<4x1xf32>,
      %cst_24 = arith.constant 9.99999974E-6 : f32
      %34 = vector.broadcast %cst_24 : f32 to vector<4x1xf32>
      %35 = arith.addf %32, %34 : vector<4x1xf32>
      %36 = math.rsqrt %35 : vector<4x1xf32>
      %c0_25 = arith.constant 0 : index
      %c0_26 = arith.constant 0 : index
      %37 = vector.load %arg4[%c0_25, %c0_26] : memref<4x1xf32, #tpu.memory_space<vmem>>, vector<4x1xf32>
      tpu.vector_store %arg4[%c0_25, %c0_26], %36 {strides = array<i32>} : memref<4x1xf32, #tpu.memory_space<vmem>>, vector<4x1xf32>,
    } else {
    }
    return
  }
  func.func @transform_0(%arg0: i32, %arg1: i32) -> (i32, i32, i32) {
    %c0_i32 = arith.constant 0 : i32
    %c0_i32_0 = arith.constant 0 : i32
    return %arg0, %c0_i32, %arg1 : i32, i32, i32
  }
  func.func @transform_1(%arg0: i32, %arg1: i32) -> (i32, i32) {
    %c0_i32 = arith.constant 0 : i32
    %c0_i32_0 = arith.constant 0 : i32
    %c0_i32_1 = arith.constant 0 : i32
    return %c0_i32, %c0_i32_0 : i32, i32
  }
  func.func @transform_2(%arg0: i32, %arg1: i32) -> (i32, i32) {
    %c0_i32 = arith.constant 0 : i32
    %c0_i32_0 = arith.constant 0 : i32
    %c0_i32_1 = arith.constant 0 : i32
    return %c0_i32, %c0_i32_0 : i32, i32
  }
}

</mosaic_0001>

<bundles_post_ra>
// kernel: tpu_custom_call.1
= control target key start
LH: loop header
LB: loop body
LE: loop exit
PB: predicated region body
PF: predicated region fallthrough
CT: control target
= control target key end

     0   :  { %8 = vsyncpa [#allocation5], 0  ;;  %s575_s0 = inlined_call_operand.hbm [shape: f32[2,4,256], index: 0, kind: input, shape index: {}]   ;;  %s576_s1 = inlined_call_operand.vmem [shape: f32[4,1], index: 1, kind: output, shape index: {0}]   ;;  %s577_s2 = inlined_call_operand.vmem [shape: f32[4,1], index: 2, kind: output, shape index: {1}]  }
   0x1   :  { %10 = vsyncpa [#allocation5 + $0x1], 0  ;;  %s443_s9 = smov 0   ;;  %s445_s10 = smov 0  }
   0x2   :  { %s447_s11 = smov 0   ;;  %s449_s12 = smov 0  }
   0x3   :  { %s451_s13 = smov 0   ;;  %s453_s14 = smov 0  }
   0x4 LB: > { %s270_s15 = sadd.s32 4294967295, %s424_s14   ;;  %s28_s16 = sadd.s32 1, %s420_s13  ;;  %s424_s14 = sphi %s453_s14, %s16_s14   ;;  %s420_s13 = sphi %s451_s13, %s587_s13   ;;  %s416_s12 = sphi %s449_s12, %s586_s12   ;;  %s412_s11 = sphi %s447_s11, %s585_s11   ;;  %s408_s10 = sphi %s445_s10, %s584_s10   ;;  %s404_s9 = sphi %s443_s9, %s583_s9  }
   0x5   : > { %p30_p0 = scmp.ge.s32.totalorder %s28_s16, 2  ;;  %s37_s17 = sadd.s32 1, %s412_s11 }
   0x6   : > { %p44_p1 = scmp.ne.s32.totalorder %s412_s11, %s408_s10  ;;  %p45_p2 = scmp.eq.s32.totalorder %s424_s14, 0 }
   0x7   : > { %s589_s16 = smov (%p30_p0, %s28_s16), 0  ;;  %p50_p4 = scmp.ne.s32.totalorder %s408_s10, %s404_s9 }
   0x8   : > { %p479_p3 = por %p45_p2, %p44_p1  ;;  %s32_s19 = ssub.s32 %s420_s13, %s589_s16 }
   0x9   : > { %p51_p5 = scmp.eq.s32.totalorder %s270_s15, 0  ;;  %p35_p6 = scmp.eq.s32.totalorder %s32_s19, 0 }
   0xa   : > { %p291_p8 = scmp.lt.s32.totalorder %s424_s14, 2  ;;  %s116_s22 = sand.u32 1, %s412_s11  }
   0xb   : > { %p486_p7 = por %p51_p5, %p50_p4  ;;  %s282_s23 = sshll.u32 %s420_s13, 7 }
   0xc   : > { %s492_s21 = scalar_select %p35_p6, %s412_s11, %s37_s17  }
   0xd   : > { %s273_s24 = sshll.u32 %s116_s22, 3  ;;  %s499_s27 = scalar_lea.hbm %s575_s0, %s282_s23 }
   0xe   : > { %s120_s28 = scalar_lea.vmem [#allocation4], %s273_s24  ;;  %p503_p9 = pnand %p291_p8, %p479_p3 }
   0xf   : > { %s130_s29 = sshll.u32 %s120_s28, 4  ;;  %s117_s3 = scalar_lea.sflag [#allocation5], %s116_s22  ;;  %s507_s29 = int_to_ptr.vmem [resolvable:$true] %s130_s29 }
  0x10   : > { %s344_s4 = scalar_lea.hbm %s499_s27, 128  ;;  %p346_p13 = pneg %p503_p9 }
  0x11   : > { %p345_p12 = scmp.ne.s32.totalorder %s499_s27, %s344_s4  ;;  %s349_s7 = scalar_lea.hbm %s575_s0, 256 }
  0x12   : > { %p350_p2 = scmp.lt.u32.totalorder %s499_s27, %s575_s0  ;;  %p351_p3 = scmp.lt.u32.totalorder %s349_s7, %s344_s4 }
  0x13   : > { %p347_p0 = pnand %p346_p13, %p345_p12  ;;  %p353_p5 = scmp.lt.u32.totalorder %s344_s4, %s499_s27 }
  0x14   : > { %p352_p4 = por %p351_p3, %p350_p2 }
  0x15   : > { %p348_p1 = pneg %p347_p0 }
  0x16   : > { %p354_p6 = por %p353_p5, %p352_p4 }
  0x18   : > { %p355_p8 = pnand %p354_p6, %p348_p1 }
  0x1a   : > { %358 = shalt.err (!%p355_p8)
}
  0x1b   : > { %s359_s15 = scalar_lea.vmem %s507_s29, 128  ;;  %s426_s17 = smov [#allocation4]  }
  0x1c   : > { %p360_p12 = scmp.ne.s32.totalorder %s507_s29, %s359_s15  ;;  %s364_s18 = sshll.u32 %s426_s17, 4  ;;  %s365_s18 = int_to_ptr.vmem [resolvable:$false] %s364_s18 }
  0x1d   : > { %s366_s19 = scalar_lea.vmem %s365_s18, 256  ;;  %p367_p11 = scmp.lt.s32.totalorder %s507_s29, %s365_s18 }
  0x1e   : > { %p362_p0 = pnand %p360_p12, %p346_p13  ;;  %p368_p2 = scmp.lt.s32.totalorder %s366_s19, %s359_s15 }
  0x20   : > { %p363_p10 = pneg %p362_p0  ;;  %p369_p3 = por %p368_p2, %p367_p11 }
  0x22   : > { %p370_p4 = pnand %p369_p3, %p363_p10 }
  0x24   : > { %373 = shalt.err (!%p370_p4)
}
  0x25   : > { %290 = dma.hbm_to_vmem [thread:$0]  (!%p503_p9), %s499_s27, 128, %s507_s29, %s117_s3  }
  0x26   : > { %p581_p1 = scmp.lt.s32.totalorder %s424_s14, 3  ;;  %p582_p5 = scmp.ge.s32.totalorder %s424_s14, 1 }
  0x28   : > { %p136_p13 = pnand %p582_p5, %p581_p1 }
  0x29   : > { %s141_s22 = sand.u32 (!%p136_p13), 1, %s408_s10  }
  0x2a   : > { %139 = sbr.rel (%p136_p13) target bundleno = 241 (0xf1), region = 24  ;;  %s277_s23 = sshll.u32 (!%p136_p13), %s141_s22, 3 }
  0x2b   : > { %s142_s24 = scalar_lea.sflag (!%p136_p13), [#allocation5], %s141_s22  ;;  %s145_s25 = scalar_lea.vmem (!%p136_p13), [#allocation4], %s277_s23 }
  0x31   : > { %399 = dma.done.wait (%p486_p7), %s142_s24, 128  }
  0x32   : > { %401 = vsyncadd (%p486_p7), %s142_s24, 4294967168  ;;  %p162_p10 = scmp.eq.s32.totalorder %s416_s12, 0 }
  0x33   : > { %vm168_vm0 = vcmask (%p162_p10), 3072   ;;  %v427_v0 = vmov (%p162_p10), 0.0  }
  0x34   : > { %167 = sbr.rel (!%p162_p10) target bundleno = 59 (0x3b), region = 32  ;;  %169 = vst.msk [vmem:[#allocation2] sm:$0xf] (%p162_p10), %vm168_vm0, %v427_v0  ;;  %170 = vst.msk [vmem:[#allocation3] sm:$0xf] (%p162_p10), %vm168_vm0, %v427_v0 }
  0x3b PF: > { %v171_v1 = vld [vmem:[%s145_s25] sm:$0xff]  ;;  %vm176_vm1 = vcmask 1043456   ;;  %p197_p7 = scmp.eq.s32.totalorder %s416_s12, 1  ;;  %v172_v11 = vld [vmem:[#allocation2] sm:$0xf]  ;;  %vm183_vm2 = vcmask 3072  }
  0x3c   : > { %v174_v2 = vcombine.high %v171_v1, %v171_v1  ;;  %v177_v3 = vsel %vm176_vm1, %v171_v1, 0.0  ;;  %v186_v4 = vmul.f32 %v171_v1, %v171_v1  ;;  %v185_v14 = vld [vmem:[#allocation3] sm:$0xf] }
  0x3e   : > { %v178_v5 = vsel %vm176_vm1, %v174_v2, 0.0  ;;  %v188_v6 = vcombine.high %v186_v4, %v186_v4  ;;  %v190_v7 = vsel %vm176_vm1, %v186_v4, 0.0 }
  0x3f   : > { %v179_v8 = vadd.f32 %v178_v5, %v177_v3 }
  0x40   : > { %v191_v9 = vsel %vm176_vm1, %v188_v6, 0.0 }
  0x41   : > { %180 = vadd.xlane.f32.xlu0 %v179_v8  ;;  %v192_v10 = vadd.f32 %v191_v9, %v190_v7 }
  0x45   : > { %193 = vadd.xlane.f32.xlu0 %v192_v10 }
  0xce   : > { %v181_v12 = vpop.xlane.xlu0 %180 }
  0xcf   : > { %v182_v13 = vadd.f32 %v181_v12, %v172_v11  ;;  %201 = sbr.rel (!%p197_p7) target bundleno = 241 (0xf1), region = 36 }
  0xd1   : > { %184 = vst.msk [vmem:[#allocation2] sm:$0xf] %vm183_vm2, %v182_v13 }
  0xd2   : > { %v194_v15 = vpop.xlane.xlu0 %193 }
  0xd3   : > { %v195_v16 = vadd.f32 %v194_v15, %v185_v14 }
  0xd5   : > { %196 = vst.msk [vmem:[#allocation3] sm:$0xf] %vm183_vm2, %v195_v16 }
  0xd8   : > { %v202_v17 = vld [vmem:[#allocation2] sm:$0xf] }
  0xd9   : > { %v203_v19 = vmul.f32 0.001953125, %v202_v17 }
  0xdb   : > { %v206_v21 = vmul.f32 %v203_v19, %v203_v19  ;;  %209 = vst.msk [vmem:[%s576_s1] sm:$0xf] %vm183_vm2, %v203_v19 }
  0xdc   : > { %v204_v18 = vld [vmem:[#allocation3] sm:$0xf] }
  0xdd   : > { %v205_v20 = vmul.f32 0.001953125, %v204_v18 }
  0xdf   : > { %v207_v22 = vsub.f32 %v205_v20, %v206_v21 }
  0xe1   : > { %v208_v23 = vmax.f32 %v207_v22, 0.0 }
  0xe3   : > { %v210_v24 = vadd.f32 1e-05, %v208_v23 }
  0xe5   : > { %342 = vrsqrt.f32 %v210_v24 }
  0xef   : > { %v343_v25 = vpop.eup %342 }
  0xf0   : > { %212 = vst.msk [vmem:[%s577_s2] sm:$0xf] %vm183_vm2, %v343_v25 }
  0xf1 PF: > { %s16_s14 = sadd.s32 1, %s424_s14   ;;  %s583_s9 = smov %s408_s10 }
  0xf2   : > { %p13_p9 = scmp.ge.s32.totalorder %s16_s14, 4   ;;  %s584_s10 = smov %s412_s11 }
  0xf3   : > { %s585_s11 = smov %s492_s21  ;;  %s586_s12 = smov %s420_s13 }
  0xf4   : > { %s587_s13 = smov %s589_s16  ;;  %15 = sbr.rel (!%p13_p9) target bundleno = 4 (0x4), region = 76 }
  0xfb   :  { %230 = vsyncpa [#allocation5], 1 }
  0xfc   :  { %232 = vsyncpa [#allocation5 + $0x1], 1 }

</bundles_post_ra>
